<compile_context>
chip_gen: v7x
topology: tpu7x:2x2x1
jax: 0.10.0
libtpu: 0.0.40
codegen_flags: <defaults>
</compile_context>

<pallas_src>
import jax
import jax.numpy as jnp
from jax.experimental import pallas as pl
from jax.experimental.pallas import tpu as pltpu


def _round_up(x, m):
    return ((x + m - 1) // m) * m


def _sum_time_kernel(x_ref, o_ref, acc_ref):
    # grid axes: (batch tile [parallel], time tile [arbitrary / reduction])
    t = pl.program_id(1)

    @pl.when(t == 0)
    def _():
        acc_ref[...] = jnp.zeros_like(acc_ref)

    # Accumulate in f32 regardless of input dtype (bf16-safe, v5e-safe).
    acc_ref[...] += jnp.sum(x_ref[...].astype(jnp.float32), axis=1)

    @pl.when(t == pl.num_programs(1) - 1)
    def _():
        o_ref[...] = acc_ref[...]


def _choose_tile_b(B, Hf, itemsize, pack, target_bytes):
    """Batch tile: must divide B and keep the 2-D output block (tile_b, Hf)
    layout-legal (tile_b == B or tile_b % 8 == 0). Prefer >=2 parallel grid
    steps (v7x megacore) while one (tile_b, pack, Hf) slab fits the budget."""
    budget_rows = max(1, target_bytes // (pack * Hf * itemsize))
    cands = [d for d in range(1, B + 1)
             if B % d == 0 and (d == B or d % 8 == 0)]
    small = [d for d in cands if d <= budget_rows and d <= max(1, B // 2)]
    if small:
        return max(small)
    within = [d for d in cands if d <= budget_rows]
    if within:
        return max(within)
    return min(cands)


def temporal_sum_pool(seq_out):
    """seq_out: (B, T, H). Returns sum over the time axis -> (B, H),
    same dtype as the input (accumulation is done in f32)."""
    B, T, H = seq_out.shape
    in_dtype = seq_out.dtype
    itemsize = jnp.dtype(in_dtype).itemsize

    LANE = 128
    TARGET_BLOCK_BYTES = 2 << 20      # ~2 MiB per input buffer
    MIN_SPLIT_BYTES = 512 << 10       # don't bother splitting tiny inputs
    PACK = {1: 32, 2: 16}.get(itemsize, 8)  # sublane packing per dtype width

    # ---- lane folding: when H < 128, pack k timesteps into the lane dim so
    # vregs / DMA tiles / stores are lane-dense. Zero-padding time is safe
    # for a sum.
    k = max(1, LANE // H) if H < LANE else 1
    if k > 1:
        T_pad = _round_up(T, k)
        if T_pad != T:
            seq_out = jnp.pad(seq_out, ((0, 0), (0, T_pad - T), (0, 0)))
        seq_out = seq_out.reshape(B, T_pad // k, k * H)
    _, Tf, Hf = seq_out.shape

    # ---- tile selection
    tile_b = _choose_tile_b(B, Hf, itemsize, PACK, TARGET_BLOCK_BYTES)

    t_budget = max(1, TARGET_BLOCK_BYTES // (tile_b * Hf * itemsize))
    full_bytes = tile_b * Tf * Hf * itemsize
    if Tf <= 4 * PACK or full_bytes <= MIN_SPLIT_BYTES:
        tile_t = Tf                                  # full extent of the axis
    else:
        # aim for >= ~4 pipelined steps along the reduction axis, within budget
        tile_t = min(t_budget, -(-Tf // 4))
        tile_t = max(PACK, (tile_t // PACK) * PACK)
        tile_t = min(tile_t, Tf)

    Tp = _round_up(Tf, tile_t)
    if Tp != Tf:
        seq_out = jnp.pad(seq_out, ((0, 0), (0, Tp - Tf), (0, 0)))

    grid = (B // tile_b, Tp // tile_t)

    cost = pl.CostEstimate(
        flops=B * Tp * Hf,
        transcendentals=0,
        bytes_accessed=B * Tp * Hf * itemsize + B * Hf * 4,
    )

    out_f32 = pl.pallas_call(
        _sum_time_kernel,
        out_shape=jax.ShapeDtypeStruct((B, Hf), jnp.float32),
        grid_spec=pltpu.PrefetchScalarGridSpec(
            num_scalar_prefetch=0,
            grid=grid,
            in_specs=[
                pl.BlockSpec((tile_b, tile_t, Hf), lambda b, t: (b, t, 0)),
            ],
            out_specs=pl.BlockSpec((tile_b, Hf), lambda b, t: (b, 0)),
            scratch_shapes=[pltpu.VMEM((tile_b, Hf), jnp.float32)],
        ),
        compiler_params=pltpu.CompilerParams(
            dimension_semantics=("parallel", "arbitrary"),
            vmem_limit_bytes=32 << 20,
        ),
        cost_estimate=cost,
    )(seq_out)

    # Undo the lane folding with a tiny (B, k, H) reduce in f32, then cast.
    if k > 1:
        out_f32 = out_f32.reshape(B, k, H).sum(axis=1)
    return out_f32.astype(in_dtype)


def temporal_avg_pooling_forward(x):
    """Mirror of TemoralAvgPooling.forward: x = (seq_out, hidden_state);
    returns x[0].sum(dim=1)."""
    return temporal_sum_pool(x[0])


if __name__ == "__main__":
    key = jax.random.PRNGKey(0)

    # Small example matching the module's usage: (batch, seq, hidden).
    B, T, H = 2, 8, 32
    k0, k1 = jax.random.split(key)
    seq_out = jax.random.normal(k0, (B, T, H), dtype=jnp.float32)
    hidden_state = jax.random.normal(k1, (1, B, H), dtype=jnp.float32)
    x = (seq_out, hidden_state)

    out = temporal_avg_pooling_forward(x)
    out = jax.block_until_ready(out)

    ref = jnp.sum(seq_out, axis=1)
    assert out.shape == (B, H)
    assert out.dtype == seq_out.dtype
    assert jnp.allclose(out, ref, atol=1e-5, rtol=1e-5)

    # Second check: exercises lane folding, multi-step pipelined reduction,
    # >=2 parallel batch tiles, and bf16 input with f32 accumulation.
    B2, T2, H2 = 16, 640, 64
    y = jax.random.normal(jax.random.PRNGKey(1), (B2, T2, H2), dtype=jnp.bfloat16)
    out2 = jax.block_until_ready(temporal_sum_pool(y))
    ref2 = jnp.sum(y.astype(jnp.float32), axis=1).astype(jnp.bfloat16)
    assert out2.shape == (B2, H2)
    assert out2.dtype == y.dtype
    assert jnp.allclose(out2.astype(jnp.float32), ref2.astype(jnp.float32),
                        atol=2e-1, rtol=2e-2)

    print("KERNEL_OK")
</pallas_src>

<mosaic_0001>
module attributes {stable_mosaic.version = 11 : i64} {
  func.func @_sum_time_kernel(%arg0: i32, %arg1: i32, %arg2: memref<2x2x128xf32, #tpu.memory_space<vmem>>, %arg3: memref<2x128xf32, #tpu.memory_space<vmem>>, %arg4: memref<2x128xf32, #tpu.memory_space<vmem>>) attributes {dimension_semantics = [#tpu.dimension_semantics<parallel>, #tpu.dimension_semantics<arbitrary>], iteration_bounds = array<i64: 1, 1>, scalar_prefetch = 0 : i64, scratch_operands = 1 : i64, tpu.core_type = #tpu.core_type<tc>, window_params = [{transform_indices = @transform_0, window_bounds = array<i64: 2, 2, 128>}, {transform_indices = @transform_1, window_bounds = array<i64: 2, 128>}]} {
    %c0_i32 = arith.constant 0 : i32
    %0 = arith.cmpi eq, %arg1, %c0_i32 : i32
    %1 = arith.extui %0 : i1 to i32
    %c0_i32_0 = arith.constant 0 : i32
    %2 = arith.cmpi ne, %1, %c0_i32_0 : i32
    scf.if %2 {
      %cst_9 = arith.constant 0.000000e+00 : f32
      %11 = vector.broadcast %cst_9 : f32 to vector<2x128xf32>
      %c0_10 = arith.constant 0 : index
      %c0_11 = arith.constant 0 : index
      %12 = vector.load %arg4[%c0_10, %c0_11] : memref<2x128xf32, #tpu.memory_space<vmem>>, vector<2x128xf32>
      tpu.vector_store %arg4[%c0_10, %c0_11], %11 {strides = array<i32>} : memref<2x128xf32, #tpu.memory_space<vmem>>, vector<2x128xf32>,
    } else {
    }
    %c0 = arith.constant 0 : index
    %c0_1 = arith.constant 0 : index
    %3 = vector.load %arg4[%c0, %c0_1] : memref<2x128xf32, #tpu.memory_space<vmem>>, vector<2x128xf32>
    %c0_2 = arith.constant 0 : index
    %c0_3 = arith.constant 0 : index
    %c0_4 = arith.constant 0 : index
    %4 = vector.load %arg2[%c0_2, %c0_3, %c0_4] : memref<2x2x128xf32, #tpu.memory_space<vmem>>, vector<2x2x128xf32>
    %cst = arith.constant dense<0.000000e+00> : vector<2x128xf32>
    %5 = vector.multi_reduction <add>, %4, %cst [1] : vector<2x2x128xf32> to vector<2x128xf32>
    %6 = arith.addf %3, %5 : vector<2x128xf32>
    %c0_5 = arith.constant 0 : index
    %c0_6 = arith.constant 0 : index
    %7 = vector.load %arg4[%c0_5, %c0_6] : memref<2x128xf32, #tpu.memory_space<vmem>>, vector<2x128xf32>
    tpu.vector_store %arg4[%c0_5, %c0_6], %6 {strides = array<i32>} : memref<2x128xf32, #tpu.memory_space<vmem>>, vector<2x128xf32>,
    %c0_i32_7 = arith.constant 0 : i32
    %8 = arith.cmpi eq, %arg1, %c0_i32_7 : i32
    %9 = arith.extui %8 : i1 to i32
    %c0_i32_8 = arith.constant 0 : i32
    %10 = arith.cmpi ne, %9, %c0_i32_8 : i32
    scf.if %10 {
      %c0_9 = arith.constant 0 : index
      %c0_10 = arith.constant 0 : index
      %11 = vector.load %arg4[%c0_9, %c0_10] : memref<2x128xf32, #tpu.memory_space<vmem>>, vector<2x128xf32>
      %c0_11 = arith.constant 0 : index
      %c0_12 = arith.constant 0 : index
      %12 = vector.load %arg3[%c0_11, %c0_12] : memref<2x128xf32, #tpu.memory_space<vmem>>, vector<2x128xf32>
      tpu.vector_store %arg3[%c0_11, %c0_12], %11 {strides = array<i32>} : memref<2x128xf32, #tpu.memory_space<vmem>>, vector<2x128xf32>,
    } else {
    }
    return
  }
  func.func @transform_0(%arg0: i32, %arg1: i32) -> (i32, i32, i32) {
    %c0_i32 = arith.constant 0 : i32
    %c0_i32_0 = arith.constant 0 : i32
    return %arg0, %arg1, %c0_i32 : i32, i32, i32
  }
  func.func @transform_1(%arg0: i32, %arg1: i32) -> (i32, i32) {
    %c0_i32 = arith.constant 0 : i32
    %c0_i32_0 = arith.constant 0 : i32
    return %arg0, %c0_i32 : i32, i32
  }
}

</mosaic_0001>

<bundles_post_ra>
// kernel: tpu_custom_call.1
= control target key start
LH: loop header
LB: loop body
LE: loop exit
PB: predicated region body
PF: predicated region fallthrough
CT: control target
= control target key end

     0   :  { %6 = vsyncpa [#allocation4], 0  ;;  %s165_s0 = inlined_call_operand.hbm [shape: f32[2,2,128], index: 0, kind: input, shape index: {}]   ;;  %s166_s1 = inlined_call_operand.hbm [shape: f32[2,128], index: 1, kind: output, shape index: {}]  }
   0x1   :  { %7 = vsyncpa [#allocation5], 0  ;;  %s126_s6 = smov [#allocation3]   ;;  %s78_s10 = scalar_lea.hbm %s165_s0, 64 }
   0x2   :  { %s13_s7 = sshll.u32 %s126_s6, 4  ;;  %p79_p0 = scmp.ne.s32.totalorder %s165_s0, %s78_s10  ;;  %s14_s7 = int_to_ptr.vmem [resolvable:$true] %s13_s7 }
   0x3   :  { %p82_p1 = scmp.lt.u32.totalorder %s78_s10, %s165_s0 }
   0x5   :  { %p84_p2 = pnand %p82_p1, %p79_p0 }
   0x7   :  { %87 = shalt.err (!%p84_p2)
}
   0x8   :  { %s88_s15 = scalar_lea.vmem %s14_s7, 64  ;;  %p93_p4 = scmp.lt.s32.totalorder %s14_s7, %s14_s7 }
   0x9   :  { %p89_p3 = scmp.ne.s32.totalorder %s14_s7, %s88_s15  ;;  %p94_p5 = scmp.lt.s32.totalorder %s88_s15, %s88_s15 }
   0xb   :  { %p95_p6 = por %p94_p5, %p93_p4 }
   0xd   :  { %p96_p7 = pnand %p95_p6, %p89_p3 }
   0xf   :  { %99 = shalt.err (!%p96_p7)
}
  0x10   :  { %s127_s16 = smov 32   ;;  %s128_s17 = smov 2  }
  0x11   :  { %19 = dma.hbm_to_vmem [thread:$0]  %s165_s0, 64, %s14_s7, [#allocation4], %s127_s16, %s127_s16, %s128_s17  }
  0x12   :  { %122 = dma.done.wait [#allocation4], 64  }
  0x13   :  { %123 = vsyncadd [#allocation4], 4294967232  ;;  %v129_v0 = vmov 0.0   ;;  %vm31_vm0 = vcmask 1041408   ;;  %v29_v1 = vld [vmem:[#allocation3] sm:$0x3] }
  0x14   :  { %27 = vst [vmem:[#allocation2] sm:$0x3] %v129_v0  ;;  %v30_v2 = vld [vmem:[#allocation3 + $0x2] sm:$0x3]  ;;  %v32_v3 = vsel %vm31_vm0, %v29_v1, 0.0  ;;  %vm48_vm1 = vcmask 1041409  }
  0x15   :  { %v39_v4 = vsel %vm31_vm0, %v30_v2, 0.0  ;;  %v33_v5 = vrot.slane %v32_v3, 4  ;;  %s130_s0 = smov [#allocation6]  }
  0x16   :  { %v40_v6 = vrot.slane %v39_v4, 4  ;;  %s64_s20 = sshll.u32 %s130_s0, 4  ;;  %s65_s20 = int_to_ptr.vmem [resolvable:$true] %s64_s20 }
  0x17   :  { %v34_v7 = vadd.f32 %v33_v5, %v32_v3  ;;  %s100_s21 = scalar_lea.vmem %s65_s20, 32  ;;  %p105_p9 = scmp.lt.s32.totalorder %s65_s20, %s65_s20 }
  0x18   :  { %v41_v8 = vadd.f32 %v40_v6, %v39_v4  ;;  %p101_p8 = scmp.ne.s32.totalorder %s65_s20, %s100_s21  ;;  %p106_p10 = scmp.lt.s32.totalorder %s100_s21, %s100_s21 }
  0x19   :  { %v35_v9 = vrot.slane %v34_v7, 2 }
  0x1a   :  { %v42_v10 = vrot.slane %v41_v8, 2  ;;  %p107_p11 = por %p106_p10, %p105_p9 }
  0x1b   :  { %v36_v11 = vadd.f32 %v35_v9, %v34_v7  ;;  %v28_v15 = vld [vmem:[#allocation2] sm:$0x3] }
  0x1c   :  { %v43_v12 = vadd.f32 %v42_v10, %v41_v8  ;;  %p108_p12 = pnand %p107_p11, %p101_p8 }
  0x1d   :  { %v37_v13 = vrot.slane %v36_v11, 1 }
  0x1e   :  { %v44_v14 = vrot.slane %v43_v12, 1 }
  0x1f   :  { %v38_v16 = vadd.f32 %v37_v13, %v36_v11 }
  0x20   :  { %v45_v17 = vadd.f32 %v44_v14, %v43_v12 }
  0x22   :  { %v49_v18 = vsel %vm48_vm1, %v45_v17, %v38_v16 }
  0x23   :  { %v51_v19 = vadd.f32 %v49_v18, %v28_v15 }
  0x25   :  { %52 = vst [vmem:[#allocation2] sm:$0x3] %v51_v19 }
  0x2c   :  { %v56_v20 = vld [vmem:[#allocation2] sm:$0x3] }
  0x2d   :  { %57 = vst [vmem:[#allocation6] sm:$0x3] %v56_v20 }
  0x2e   :  { %111 = shalt.err (!%p108_p12)
}
  0x2f   :  { %s112_s24 = scalar_lea.hbm %s166_s1, 32 }
  0x30   :  { %p113_p13 = scmp.ne.s32.totalorder %s166_s1, %s112_s24  ;;  %p116_p0 = scmp.lt.u32.totalorder %s112_s24, %s166_s1 }
  0x32   :  { %p118_p1 = pnand %p116_p0, %p113_p13 }
  0x34   :  { %121 = shalt.err (!%p118_p1)
}
  0x35   :  { %67 = dma.vmem_to_hbm [thread:$0]  %s65_s20, 32, %s166_s1, [#allocation5]  }
  0x36   :  { %124 = dma.done.wait [#allocation5], 32  }
  0x37   :  { %125 = vsyncadd [#allocation5], 4294967264 }
  0x38   :  { %71 = vsyncpa [#allocation4], 1 }
  0x39   :  { %72 = vsyncpa [#allocation5], 1 }

</bundles_post_ra>
